<compile_context>
chip_gen: v6e
topology: v6e:2x2x1
jax: 0.10.0
libtpu: 0.0.40
codegen_flags: <defaults>
</compile_context>

<pallas_src>
import functools

import jax
import jax.numpy as jnp
from jax.experimental import pallas as pl
from jax.experimental.pallas import tpu as pltpu


# ---------------------------------------------------------------------------
# Fused kernel: one-hot gather+pool (MXU) -> projection (MXU) -> L2 normalize
# ---------------------------------------------------------------------------
def _encoder_kernel(ids_ref,     # VMEM (TB, S)  int32  masked ids (-1 = ignore)
                    invc_ref,    # VMEM (TB, 1)  f32    1 / max(valid count, 1)
                    tab_ref,     # VMEM (V, H)   f32    embedding table (resident)
                    w_ref,       # VMEM (H, E)   bf16   projection weight (resident)
                    b_ref,       # VMEM (1, E)   f32    projection bias (resident)
                    o_ref,       # VMEM (TB, E)  f32    output block
                    *, tb, seq, vocab):
    # One-hot over the vocab (lane axis); masked tokens are -1 and never match.
    ids3 = ids_ref[...][:, :, None]                                   # (TB, S, 1)
    iota_v = jax.lax.broadcasted_iota(jnp.int32, (tb, seq, vocab), 2)  # (TB, S, V)
    onehot = (ids3 == iota_v).astype(jnp.float32)                     # (TB, S, V)

    # Masked sum pooling folded into token multiplicities, then one MXU matmul
    # against the VMEM-resident table performs gather + pooling at once.
    wsum = jnp.sum(onehot, axis=1)                                    # (TB, V)
    pooled_sum = jnp.dot(wsum, tab_ref[...],
                         preferred_element_type=jnp.float32)          # (TB, H)
    pooled = pooled_sum * invc_ref[...]                               # (TB, H)

    # Dense projection on the MXU (bf16 operands, f32 accumulate) + bias.
    proj = jnp.dot(pooled.astype(w_ref.dtype), w_ref[...],
                   preferred_element_type=jnp.float32) + b_ref[...]   # (TB, E)

    # L2 normalize (EUP rsqrt).
    sq = jnp.sum(proj * proj, axis=-1, keepdims=True)
    o_ref[...] = (proj * jax.lax.rsqrt(sq + 1e-12)).astype(o_ref.dtype)


def _pick_tile_b(batch):
    """Full MXU height on large batches (256 on v6e/v7x, 128 fills v5e), but
    keep >=2 grid tiles whenever the batch allows so both v7x TensorCores get
    work (batch axis is marked "parallel")."""
    for tb in (256, 128, 64, 32, 16, 8):
        if batch >= 2 * tb:
            return tb
    return 8


def encoder_pallas(input_ids, attention_mask, table, weight, bias, *, tile_b=None):
    """input_ids/attention_mask: (B, S); table: (V, H) f32; weight: (H, E) bf16;
    bias: (E,) f32.  Returns (B, E) f32 L2-normalized embeddings."""
    B, S = input_ids.shape
    V, H = table.shape
    E = weight.shape[1]
    if tile_b is None:
        tile_b = _pick_tile_b(B)

    # Pad the batch to a whole number of tiles; padded rows have all ids == -1
    # and are sliced off at the end.
    n_tiles = pl.cdiv(B, tile_b)
    Bp = n_tiles * tile_b
    ids = input_ids.astype(jnp.int32)
    mask = attention_mask.astype(jnp.float32)
    if Bp != B:
        pad = Bp - B
        ids = jnp.pad(ids, ((0, pad), (0, 0)))
        mask = jnp.pad(mask, ((0, pad), (0, 0)))

    # Move all mask work out of the kernel (review feedback): masked/padded
    # tokens -> -1 (never matches the one-hot iota) and per-row 1/count.
    masked_ids = jnp.where(mask > 0, ids, -1)
    inv_count = 1.0 / jnp.maximum(mask.sum(axis=1, keepdims=True), 1.0)   # (Bp,1)
    bias2 = bias.reshape(1, E).astype(jnp.float32)

    kernel = functools.partial(_encoder_kernel, tb=tile_b, seq=S, vocab=V)

    out = pl.pallas_call(
        kernel,
        out_shape=jax.ShapeDtypeStruct((Bp, E), jnp.float32),
        grid_spec=pltpu.PrefetchScalarGridSpec(
            num_scalar_prefetch=0,
            grid=(n_tiles,),
            in_specs=[
                pl.BlockSpec((tile_b, S), lambda i: (i, 0)),   # masked ids
                pl.BlockSpec((tile_b, 1), lambda i: (i, 0)),   # 1/count
                pl.BlockSpec((V, H), lambda i: (0, 0)),        # table (VMEM-resident)
                pl.BlockSpec((H, E), lambda i: (0, 0)),        # weight (resident)
                pl.BlockSpec((1, E), lambda i: (0, 0)),        # bias (resident)
            ],
            out_specs=pl.BlockSpec((tile_b, E), lambda i: (i, 0)),
        ),
        compiler_params=pltpu.CompilerParams(
            dimension_semantics=("parallel",),        # megacore-shard batch tiles
            vmem_limit_bytes=48 * 1024 * 1024,        # > 32 MiB default, < v7x 64 MiB
        ),
    )(masked_ids, inv_count, table.astype(jnp.float32), weight, bias2)

    return out[:B]


# ---------------------------------------------------------------------------
# Encoder: parameters + thin wrapper around the fused Pallas kernel
# ---------------------------------------------------------------------------
class TextEncoder:
    def __init__(self, key, vocab_size, hidden, emb_dim, tile_b=None):
        k_emb, k_w, k_b = jax.random.split(key, 3)
        # Table kept f32 (exact gather via one-hot matmul); projection weight
        # bf16 with f32 accumulation inside the kernel (documented tradeoff).
        self.embedding = (jax.random.normal(k_emb, (vocab_size, hidden),
                                            dtype=jnp.float32) * 0.02)
        self.weight = (jax.random.normal(k_w, (hidden, emb_dim),
                                         dtype=jnp.float32)
                       * (1.0 / hidden ** 0.5)).astype(jnp.bfloat16)
        self.bias = jax.random.normal(k_b, (emb_dim,), dtype=jnp.float32) * 0.01
        self.tile_b = tile_b

    def forward_ids(self, input_ids, attention_mask):
        return encoder_pallas(input_ids, attention_mask,
                              self.embedding, self.weight, self.bias,
                              tile_b=self.tile_b)

    def __call__(self, inputs):
        return self.forward_ids(inputs["input_ids"], inputs["attention_mask"])


# ---------------------------------------------------------------------------
# Model: mirrors corgee Model dispatch semantics (encoders + clone_encoders)
# ---------------------------------------------------------------------------
class Model:
    def __init__(self, config):
        self.config = config
        self.encoders = {}
        self.clone_encoders = {}
        for key, enc_conf in config["encoders"].items():
            if isinstance(enc_conf, str):
                self.clone_encoders[key] = enc_conf        # alias of another encoder
            else:
                self.encoders[key] = TextEncoder(
                    key=jax.random.PRNGKey(enc_conf["seed"]),
                    vocab_size=enc_conf["vocab_size"],
                    hidden=enc_conf["hidden"],
                    emb_dim=enc_conf["emb_dim"],
                )
        # TODO(synk): loss module, DDP wrapping, no_sync(), torch.compile and
        # parameter-count logging are training infrastructure with no
        # forward-pass compute; not translated.

    def _resolve(self, k):
        return k if k in self.encoders else self.clone_encoders[k]

    def encoder_forward(self, k, inputs):
        return self.encoders[self._resolve(k)](inputs)

    def forward(self, batch_data):
        # TODO(synk): return_layerwise has no equivalent for this single-block
        # encoder and is not implemented.
        results = {}
        groups = {}
        for k, v in batch_data.items():
            if v is None:
                results[k] = None
            else:
                groups.setdefault(self._resolve(k), []).append(k)

        for name, keys in groups.items():
            enc = self.encoders[name]
            same_seq = len({batch_data[k]["input_ids"].shape[1] for k in keys}) == 1
            if len(keys) > 1 and same_seq:
                # Keys sharing parameters (query + its clone "doc") run through
                # one pallas_call on a concatenated batch: single launch, a
                # longer grid (>=2 tiles -> both v7x TCs), weights resident.
                ids = jnp.concatenate([batch_data[k]["input_ids"] for k in keys], 0)
                msk = jnp.concatenate([batch_data[k]["attention_mask"] for k in keys], 0)
                emb = enc.forward_ids(ids, msk)
                off = 0
                for k in keys:
                    b = batch_data[k]["input_ids"].shape[0]
                    results[k] = emb[off:off + b]
                    off += b
            else:
                for k in keys:
                    results[k] = enc(batch_data[k])

        return {k: results[k] for k in batch_data}   # preserve input key order


# ---------------------------------------------------------------------------
def _reference_encoder(input_ids, attention_mask, table, weight, bias):
    x = jnp.take(table.astype(jnp.float32), input_ids, axis=0)
    m = attention_mask.astype(jnp.float32)[:, :, None]
    pooled = (x * m).sum(1) / jnp.maximum(m.sum(1), 1.0)
    proj = pooled @ weight.astype(jnp.float32) + bias.reshape(1, -1)
    return proj / jnp.sqrt((proj * proj).sum(-1, keepdims=True) + 1e-12)


if __name__ == "__main__":
    # Small, TPU-friendly shapes: H = E = 128 (lane-dense), seq = 8, vocab 512.
    S, H, E, V = 8, 128, 128, 512
    B_QUERY, B_DOC = 8, 6            # doc batch exercises the padding path

    config = {
        "encoders": {
            "query": {"seed": 0, "vocab_size": V, "hidden": H, "emb_dim": E},
            "doc": "query",          # clone encoder: shares query's parameters
        },
    }
    model = Model(config)

    rng = jax.random.PRNGKey(0)
    k_q, k_d, k_mq, k_md = jax.random.split(rng, 4)
    batch_data = {
        "query": {
            "input_ids": jax.random.randint(k_q, (B_QUERY, S), 0, V, dtype=jnp.int32),
            "attention_mask": (jax.random.uniform(k_mq, (B_QUERY, S)) > 0.2
                               ).astype(jnp.int32),
        },
        "doc": {
            "input_ids": jax.random.randint(k_d, (B_DOC, S), 0, V, dtype=jnp.int32),
            "attention_mask": (jax.random.uniform(k_md, (B_DOC, S)) > 0.2
                               ).astype(jnp.int32),
        },
        "missing": None,             # None inputs pass through as None
    }

    out = model.forward(batch_data)
    jax.block_until_ready({k: v for k, v in out.items() if v is not None})

    enc = model.encoders["query"]
    for k, v in batch_data.items():
        if v is None:
            assert out[k] is None
            continue
        assert out[k].shape == (v["input_ids"].shape[0], E), (k, out[k].shape)
        ref = _reference_encoder(v["input_ids"], v["attention_mask"],
                                 enc.embedding, enc.weight, enc.bias)
        assert jnp.allclose(out[k], ref, atol=2e-2), (
            k, float(jnp.max(jnp.abs(out[k] - ref))))

    print("KERNEL_OK")
</pallas_src>

<mosaic_0001>
module attributes {stable_mosaic.version = 11 : i64} {
  func.func @_encoder_kernel(%arg0: i32, %arg1: memref<8x8xi32, #tpu.memory_space<vmem>>, %arg2: memref<8x1xf32, #tpu.memory_space<vmem>>, %arg3: memref<512x128xf32, #tpu.memory_space<vmem>>, %arg4: memref<128x128xbf16, #tpu.memory_space<vmem>>, %arg5: memref<1x128xf32, #tpu.memory_space<vmem>>, %arg6: memref<8x128xf32, #tpu.memory_space<vmem>>) attributes {dimension_semantics = [#tpu.dimension_semantics<parallel>], iteration_bounds = array<i64: 2>, scalar_prefetch = 0 : i64, scratch_operands = 0 : i64, tpu.core_type = #tpu.core_type<tc>, window_params = [{transform_indices = @transform_0, window_bounds = array<i64: 8, 8>}, {transform_indices = @transform_1, window_bounds = array<i64: 8, 1>}, {pipeline_mode = #tpu.pipeline_mode<synchronous>, transform_indices = @transform_2, window_bounds = array<i64: 512, 128>}, {pipeline_mode = #tpu.pipeline_mode<synchronous>, transform_indices = @transform_3, window_bounds = array<i64: 128, 128>}, {pipeline_mode = #tpu.pipeline_mode<synchronous>, transform_indices = @transform_4, window_bounds = array<i64: 1, 128>}, {transform_indices = @transform_5, window_bounds = array<i64: 8, 128>}]} {
    %c0 = arith.constant 0 : index
    %c0_0 = arith.constant 0 : index
    %0 = vector.load %arg1[%c0, %c0_0] : memref<8x8xi32, #tpu.memory_space<vmem>>, vector<8x8xi32>
    %1 = vector.shape_cast %0 : vector<8x8xi32> to vector<8x8x1xi32>
    %2 = tpu.iota {dimensions = array<i32: 2>} : vector<8x8x512xi32>
    %3 = vector.broadcast %1 : vector<8x8x1xi32> to vector<8x8x512xi32>
    %4 = arith.cmpi eq, %3, %2 : vector<8x8x512xi32>
    %5 = arith.extui %4 : vector<8x8x512xi1> to vector<8x8x512xi32>
    %6 = arith.sitofp %5 : vector<8x8x512xi32> to vector<8x8x512xf32>
    %cst = arith.constant dense<0.000000e+00> : vector<8x512xf32>
    %7 = vector.multi_reduction <add>, %6, %cst [1] : vector<8x8x512xf32> to vector<8x512xf32>
    %c0_1 = arith.constant 0 : index
    %c0_2 = arith.constant 0 : index
    %8 = vector.load %arg3[%c0_1, %c0_2] : memref<512x128xf32, #tpu.memory_space<vmem>>, vector<512x128xf32>
    %cst_3 = arith.constant dense<0.000000e+00> : vector<8x128xf32>
    %9 = tpu.matmul %7, %8, %cst_3 {dimension_numbers = #tpu.dot_dimension_numbers<[1], [0], [0], [1], [0, 0, 1, 1], [], []>} : vector<8x512xf32>, vector<512x128xf32>, vector<8x128xf32> -> vector<8x128xf32>
    %c0_4 = arith.constant 0 : index
    %c0_5 = arith.constant 0 : index
    %10 = vector.load %arg2[%c0_4, %c0_5] : memref<8x1xf32, #tpu.memory_space<vmem>>, vector<8x1xf32>
    %11 = vector.broadcast %10 : vector<8x1xf32> to vector<8x128xf32>
    %12 = arith.mulf %9, %11 : vector<8x128xf32>
    %13 = arith.truncf %12 : vector<8x128xf32> to vector<8x128xbf16>
    %c0_6 = arith.constant 0 : index
    %c0_7 = arith.constant 0 : index
    %14 = vector.load %arg4[%c0_6, %c0_7] : memref<128x128xbf16, #tpu.memory_space<vmem>>, vector<128x128xbf16>
    %cst_8 = arith.constant dense<0.000000e+00> : vector<8x128xf32>
    %15 = tpu.matmul %13, %14, %cst_8 {dimension_numbers = #tpu.dot_dimension_numbers<[1], [0], [0], [1], [0, 0, 1, 1], [], []>} : vector<8x128xbf16>, vector<128x128xbf16>, vector<8x128xf32> -> vector<8x128xf32>
    %c0_9 = arith.constant 0 : index
    %c0_10 = arith.constant 0 : index
    %16 = vector.load %arg5[%c0_9, %c0_10] : memref<1x128xf32, #tpu.memory_space<vmem>>, vector<1x128xf32>
    %17 = vector.broadcast %16 : vector<1x128xf32> to vector<8x128xf32>
    %18 = arith.addf %15, %17 : vector<8x128xf32>
    %19 = arith.mulf %18, %18 : vector<8x128xf32>
    %cst_11 = arith.constant dense<0.000000e+00> : vector<8xf32>
    %20 = vector.multi_reduction <add>, %19, %cst_11 [1] : vector<8x128xf32> to vector<8xf32>
    %21 = vector.shape_cast %20 : vector<8xf32> to vector<8x1xf32>
    %cst_12 = arith.constant 9.99999996E-13 : f32
    %22 = vector.broadcast %cst_12 : f32 to vector<8x1xf32>
    %23 = arith.addf %21, %22 : vector<8x1xf32>
    %24 = math.rsqrt %23 : vector<8x1xf32>
    %25 = vector.broadcast %24 : vector<8x1xf32> to vector<8x128xf32>
    %26 = arith.mulf %18, %25 : vector<8x128xf32>
    %c0_13 = arith.constant 0 : index
    %c0_14 = arith.constant 0 : index
    %27 = vector.load %arg6[%c0_13, %c0_14] : memref<8x128xf32, #tpu.memory_space<vmem>>, vector<8x128xf32>
    tpu.vector_store %arg6[%c0_13, %c0_14], %26 {strides = array<i32>} : memref<8x128xf32, #tpu.memory_space<vmem>>, vector<8x128xf32>,
    return
  }
  func.func @transform_0(%arg0: i32) -> (i32, i32) {
    %c0_i32 = arith.constant 0 : i32
    %c0_i32_0 = arith.constant 0 : i32
    return %arg0, %c0_i32 : i32, i32
  }
  func.func @transform_1(%arg0: i32) -> (i32, i32) {
    %c0_i32 = arith.constant 0 : i32
    %c0_i32_0 = arith.constant 0 : i32
    return %arg0, %c0_i32 : i32, i32
  }
  func.func @transform_2(%arg0: i32) -> (i32, i32) {
    %c0_i32 = arith.constant 0 : i32
    %c0_i32_0 = arith.constant 0 : i32
    %c0_i32_1 = arith.constant 0 : i32
    return %c0_i32, %c0_i32_0 : i32, i32
  }
  func.func @transform_3(%arg0: i32) -> (i32, i32) {
    %c0_i32 = arith.constant 0 : i32
    %c0_i32_0 = arith.constant 0 : i32
    %c0_i32_1 = arith.constant 0 : i32
    return %c0_i32, %c0_i32_0 : i32, i32
  }
  func.func @transform_4(%arg0: i32) -> (i32, i32) {
    %c0_i32 = arith.constant 0 : i32
    %c0_i32_0 = arith.constant 0 : i32
    %c0_i32_1 = arith.constant 0 : i32
    return %c0_i32, %c0_i32_0 : i32, i32
  }
  func.func @transform_5(%arg0: i32) -> (i32, i32) {
    %c0_i32 = arith.constant 0 : i32
    %c0_i32_0 = arith.constant 0 : i32
    return %arg0, %c0_i32 : i32, i32
  }
}

</mosaic_0001>

<bundles_post_ra>
// kernel: tpu_custom_call.1
= control target key start
LH: loop header
LB: loop body
LE: loop exit
PB: predicated region body
PF: predicated region fallthrough
CT: control target
= control target key end

     0   :  { %10 = vsyncpa [#allocation3], 0  ;;  %s1871_s0 = inlined_call_operand.vmem [shape: s32[16,8], index: 0, kind: input, shape index: {}]   ;;  %s1872_s1 = inlined_call_operand.vmem [shape: f32[16,1], index: 1, kind: input, shape index: {}]   ;;  %s1873_s2 = inlined_call_operand.hbm [shape: f32[512,128], index: 2, kind: input, shape index: {}]   ;;  %s1874_s3 = inlined_call_operand.hbm [shape: bf16[128,128], index: 3, kind: input, shape index: {}]   ;;  %s1875_s4 = inlined_call_operand.vmem [shape: f32[1,128], index: 4, kind: input, shape index: {}]   ;;  %s1876_s5 = inlined_call_operand.hbm [shape: f32[16,128], index: 5, kind: output, shape index: {}]  }
   0x1   :  { %11 = vsyncpa [#allocation6], 0 }
   0x2   :  { %12 = vsyncpa [#allocation4], 0 }
   0x3   :  { %14 = vsyncpa [#allocation4 + $0x1], 0  ;;  %s1521_s18 = smov 0   ;;  %s1523_s19 = smov 0  }
   0x4   :  { %s1525_s20 = smov 0   ;;  %s1527_s21 = smov 0  }
   0x5 LB: > { %s1542_s22 = sadd.s32 4294967295, %s1479_s21   ;;  %s1126_s23 = sadd.s32 4294967294, %s1479_s21   ;;  %s1479_s21 = sphi %s1527_s21, %s1890_s21   ;;  %s1475_s20 = sphi %s1525_s20, %s1889_s20   ;;  %s1471_s19 = sphi %s1523_s19, %s1888_s19   ;;  %s1467_s18 = sphi %s1521_s18, %s1887_s18  }
   0x6   : > { %s1546_s24 = sadd.s32 1, %s1479_s21   ;;  %s142_s25 = sadd.s32 1, %s1475_s20 }
   0x7   : > { %s139_s26 = ssub.s32 %s1479_s21, %s1546_s24  ;;  %p152_p0 = scmp.ne.s32.totalorder %s1475_s20, %s1471_s19 }
   0x8   : > { %p140_p1 = scmp.eq.s32.totalorder %s139_s26, 0  ;;  %p153_p2 = scmp.eq.s32.totalorder %s1542_s22, 1 }
   0x9   : > { %p158_p3 = scmp.ne.s32.totalorder %s1471_s19, %s1467_s18  ;;  %p159_p4 = scmp.eq.s32.totalorder %s1126_s23, 1 }
   0xa   : > { %s1557_s27 = scalar_select %p140_p1, %s1475_s20, %s142_s25  }
   0xb   : > { %p1559_p5 = por %p153_p2, %p152_p0  ;;  %p1563_p6 = por %p159_p4, %p158_p3 }
   0xc   : > { %p1127_p7 = scmp.ge.s32.totalorder %s1479_s21, 1  ;;  %p166_p8 = scmp.lt.s32.totalorder %s1479_s21, 3 }
   0xd   : > { %s1879_s29 = scalar_select %p1563_p6, 1, 0 }
   0xe   : > { %p1877_p9 = scmp.eq.s32.totalorder %s1542_s22, 0  ;;  %p1570_p10 = pnand %p1127_p7, %p166_p8 }
   0xf   : > { %s1481_s6 = smov [#allocation2]   ;;  %s1482_s9 = smov [#allocation5]  }
  0x10   : > { %s178_s7 = sshll.u32 %s1481_s6, 4  ;;  %p1291_p11 = pneg %p1570_p10  ;;  %s179_s7 = int_to_ptr.vmem [resolvable:$true] %s178_s7 }
  0x11   : > { %s191_s10 = sshll.u32 %s1482_s9, 4  ;;  %s1370_s11 = scalar_lea.vmem %s179_s7, 8192  ;;  %s192_s10 = int_to_ptr.vmem [resolvable:$true] %s191_s10 }
  0x12   : > { %p1578_p12 = pnand %p1877_p9, %p1291_p11  ;;  %p1371_p0 = scmp.ne.s32.totalorder %s179_s7, %s1370_s11 }
  0x13   : > { %p1378_p3 = scmp.lt.s32.totalorder %s179_s7, %s179_s7  ;;  %p1379_p4 = scmp.lt.s32.totalorder %s1370_s11, %s1370_s11 }
  0x14   : > { %p1361_p13 = pneg %p1578_p12 }
  0x15   : > { %p1380_p7 = por %p1379_p4, %p1378_p3 }
  0x16   : > { %p1373_p1 = pnand %p1371_p0, %p1361_p13 }
  0x18   : > { %p1374_p2 = pneg %p1373_p1 }
  0x1a   : > { %p1381_p8 = pnand %p1380_p7, %p1374_p2 }
  0x1c   : > { %1384 = shalt.err (!%p1381_p8)
}
  0x1d   : > { %s1483_s12 = smov 128   ;;  %s1484_s13 = smov 8  }
  0x1e   : > { %1294 = dma.hbm_to_vmem [thread:$0]  (!%p1578_p12), %s1873_s2, 8192, %s179_s7, [#allocation3], %s1483_s12, %s1483_s12, %s1484_s13  }
  0x1f   : > { %s1396_s16 = scalar_lea.vmem %s192_s10, 1024  ;;  %p1404_p9 = scmp.lt.s32.totalorder %s192_s10, %s192_s10 }
  0x20   : > { %p1397_p11 = scmp.ne.s32.totalorder %s192_s10, %s1396_s16  ;;  %p1405_p6 = scmp.lt.s32.totalorder %s1396_s16, %s1396_s16 }
  0x22   : > { %p1399_p0 = pnand %p1397_p11, %p1361_p13  ;;  %p1406_p3 = por %p1405_p6, %p1404_p9 }
  0x24   : > { %p1400_p1 = pneg %p1399_p0 }
  0x26   : > { %p1407_p2 = pnand %p1406_p3, %p1400_p1 }
  0x28   : > { %1410 = shalt.err (!%p1407_p2)
}
  0x29   : > { %s1485_s17 = smov 64   ;;  %s1486_s23 = smov 4  }
  0x2a   : > { %1297 = dma.hbm_to_vmem [thread:$0]  (!%p1578_p12), %s1874_s3, 1024, %s192_s10, [#allocation6], %s1485_s17, %s1485_s17, %s1486_s23  }
  0x2b   : > { %224 = sbr.rel (%p1570_p10) target bundleno = 836 (0x344), region = 40  ;;  %p1882_p4 = scmp.eq.s32.totalorder (!%p1570_p10), %s1542_s22, 0 }
  0x30   : > { %1454 = dma.done.wait (%p1882_p4), [#allocation3], 8192   ;;  %p1883_p13 = pmov %p1882_p4 }
  0x31   : > { %p1884_p6 = pmov %p1882_p4 }
  0x32   : > { %1456 = vsyncadd (%p1883_p13), [#allocation3], 4294959104 }
  0x33   : > { %1458 = dma.done.wait (%p1884_p6), [#allocation6], 1024   ;;  %p1885_p9 = pmov %p1882_p4 }
  0x34   : > { %p259_p7 = scmp.lt.s32.totalorder %s1542_s22, 1  ;;  %v269_v0 = vlaneseq  ;;  %v1487_v1 = vmov 0.0   ;;  %v649_v8 = vld [vmem:[#allocation2 + $0xf8] sm:$0xff]  ;;  %v648_v12 = vld [vmem:[#allocation2 + $0xf0] sm:$0xff]  ;;  %v647_v18 = vld [vmem:[#allocation2 + $0xe8] sm:$0xff]  ;;  %v1488_v53 = vmov 0  }
  0x35   : > { %1460 = vsyncadd (%p1885_p9), [#allocation6], 4294966272  ;;  %1261 = vmatprep.subr.bf16.mxu0 %v1487_v1  ;;  %v633_v9 = vld [vmem:[#allocation2 + $0x78] sm:$0xff]  ;;  %1182 = vmatprep.subr.mxu1 %v649_v8  ;;  %v632_v17 = vld [vmem:[#allocation2 + $0x70] sm:$0xff]  ;;  %s256_s15 = sand.u32 1, %s1471_s19   ;;  %s1179_s17 = sshll.u32 %s1542_s22, 7 }
  0x36   : > { %s1613_s30 = scalar_select %p259_p7, %s1542_s22, 1  ;;  %v270_v2 = vshrl.u32 %v269_v0, 7  ;;  %1183 = vmatpush3.msra.mxu1 %v633_v9  ;;  %v631_v21 = vld [vmem:[#allocation2 + $0x68] sm:$0xff]  ;;  %v646_v22 = vld [vmem:[#allocation2 + $0xe0] sm:$0xff]  ;;  %v645_v26 = vld [vmem:[#allocation2 + $0xd8] sm:$0xff]  ;;  %1348 = vset.pattern.permute.xlu0 %v1488_v53  ;;  %v1628_v55 = vand.u32 127, %v269_v0 }
  0x37   : > { %1184 = vmatprep.subr.mxu1 %v648_v12  ;;  %v630_v23 = vld [vmem:[#allocation2 + $0x60] sm:$0xff]  ;;  %v629_v29 = vld [vmem:[#allocation2 + $0x58] sm:$0xff]  ;;  %v644_v30 = vld [vmem:[#allocation2 + $0xd0] sm:$0xff]  ;;  %s1134_s16 = sshll.u32 %s256_s15, 3  ;;  %s1020_s7 = scalar_lea.sflag [#allocation4], %s256_s15 }
  0x38   : > { %s1135_s6 = sshll.u32 %s1613_s30, 3  ;;  %v285_v3 = vsub.s32 2, %v270_v2  ;;  %v271_v4 = vsub.s32 0, %v270_v2  ;;  %v292_v5 = vsub.s32 3, %v270_v2  ;;  %v278_v6 = vsub.s32 1, %v270_v2  ;;  %1185 = vmatpush3.msra.mxu1 %v632_v17  ;;  %v628_v31 = vld [vmem:[#allocation2 + $0x50] sm:$0xff] }
  0x39   : > { %s262_s9 = scalar_lea.vmem %s1871_s0, %s1135_s6  ;;  %v306_v13 = vsub.s32 5, %v270_v2  ;;  %v299_v14 = vsub.s32 4, %v270_v2  ;;  %v320_v15 = vsub.s32 7, %v270_v2  ;;  %v313_v16 = vsub.s32 6, %v270_v2  ;;  %1186 = vmatprep.subr.mxu1 %v647_v18  ;;  %v643_v32 = vld [vmem:[#allocation2 + $0xc8] sm:$0xff]  ;;  %v642_v34 = vld [vmem:[#allocation2 + $0xc0] sm:$0xff]  ;;  %s266_s12 = scalar_lea.vmem %s1872_s1, %s1135_s6 }
  0x3a   : > { %v268_v7 = vld [vmem:[%s262_s9] sm:$0xff]  ;;  %1187 = vmatpush3.msra.mxu1 %v631_v21  ;;  %v627_v33 = vld [vmem:[#allocation2 + $0x48] sm:$0xff]  ;;  %v641_v36 = vld [vmem:[#allocation2 + $0xb8] sm:$0xff]  ;;  %v1631_v56 = vadd.s32 128, %v1628_v55  ;;  %v1634_v58 = vadd.s32 384, %v1628_v55  ;;  %v1649_v9 = vadd.s32 256, %v1628_v55  ;;  %s1031_s6 = scalar_lea.hbm %s1876_s5, %s1179_s17 }
  0x3b   : > { %v286_v10 = vrot.slane %v268_v7, %v285_v3  ;;  %v272_v11 = vrot.slane %v268_v7, %v271_v4  ;;  %v293_v19 = vrot.slane %v268_v7, %v292_v5  ;;  %v279_v20 = vrot.slane %v268_v7, %v278_v6  ;;  %1188 = vmatprep.subr.mxu1 %v646_v22  ;;  %v626_v35 = vld [vmem:[#allocation2 + $0x40] sm:$0xff]  ;;  %v625_v37 = vld [vmem:[#allocation2 + $0x38] sm:$0xff]  ;;  %v640_v38 = vld [vmem:[#allocation2 + $0xb0] sm:$0xff]  ;;  %s258_s23 = scalar_lea.vmem [#allocation7], %s1134_s16  ;;  %s1490_s9 = smov [#allocation7]  }
  0x3c   : > { %v307_v24 = vrot.slane %v268_v7, %v306_v13  ;;  %v300_v25 = vrot.slane %v268_v7, %v299_v14  ;;  %1189 = vmatpush3.msra.mxu1 %v630_v23  ;;  %v321_v27 = vrot.slane %v268_v7, %v320_v15  ;;  %v314_v28 = vrot.slane %v268_v7, %v313_v16  ;;  %v624_v39 = vld [vmem:[#allocation2 + $0x30] sm:$0xff]  ;;  %v639_v40 = vld [vmem:[#allocation2 + $0xa8] sm:$0xff]  ;;  %v638_v42 = vld [vmem:[#allocation2 + $0xa0] sm:$0xff]  ;;  %s1033_s25 = sshll.u32 %s258_s23, 4  ;;  %s1415_s10 = sshll.u32 %s1490_s9, 4  ;;  %s1034_s25 = int_to_ptr.vmem [resolvable:$true] %s1033_s25  ;;  %s1416_s10 = int_to_ptr.vmem [resolvable:$false] %s1415_s10 }
  0x3d   : > { %288 = vbcast.lane.b32.xlu1 %v286_v10, 256  ;;  %274 = vbcast.lane.b32.xlu0 %v272_v11, 256  ;;  %v623_v41 = vld [vmem:[#allocation2 + $0x28] sm:$0xff]  ;;  %v622_v43 = vld [vmem:[#allocation2 + $0x20] sm:$0xff]  ;;  %v637_v44 = vld [vmem:[#allocation2 + $0x98] sm:$0xff]  ;;  %s1411_s8 = scalar_lea.vmem %s1034_s25, 128  ;;  %p1418_p11 = scmp.lt.s32.totalorder %s1034_s25, %s1416_s10 }
  0x3e   : > { %1190 = vmatprep.subr.mxu1 %v645_v26  ;;  %v621_v45 = vld [vmem:[#allocation2 + $0x18] sm:$0xff]  ;;  %v636_v46 = vld [vmem:[#allocation2 + $0x90] sm:$0xff]  ;;  %v635_v48 = vld [vmem:[#allocation2 + $0x88] sm:$0xff]  ;;  %p1412_p10 = scmp.ne.s32.totalorder %s1034_s25, %s1411_s8  ;;  %s1417_s22 = scalar_lea.vmem %s1416_s10, 256 }
  0x3f   : > { %1191 = vmatpush3.msra.mxu1 %v629_v29  ;;  %v620_v47 = vld [vmem:[#allocation2 + $0x10] sm:$0xff]  ;;  %v619_v49 = vld [vmem:[#allocation2 + $0x8] sm:$0xff]  ;;  %v634_v50 = vld [vmem:[#allocation2 + $0x80] sm:$0xff]  ;;  %p1419_p0 = scmp.lt.s32.totalorder %s1417_s22, %s1411_s8 }
  0x40   : > { %1192 = vmatprep.subr.mxu1 %v644_v30  ;;  %v618_v51 = vld [vmem:[#allocation2] sm:$0xff]  ;;  %v681_v52 = vld [vmem:[#allocation2 + $0x1f8] sm:$0xff]  ;;  %p1413_p12 = pnand %p1412_p10, %p1559_p5 }
  0x41   : > { %295 = vbcast.lane.b32.xlu1 %v293_v19, 256  ;;  %281 = vbcast.lane.b32.xlu0 %v279_v20, 256  ;;  %v893_v54 = vld [vmem:[%s266_s12] sm:$0xff]  ;;  %p1420_p1 = por %p1419_p0, %p1418_p11 }
  0x42   : > { %1193 = vmatpush3.msra.mxu1 %v628_v31  ;;  %p1414_p8 = pneg %p1413_p12 }
  0x43   : > { %1194 = vmatprep.subr.mxu1 %v643_v32 }
  0x44   : > { %1195 = vmatpush3.msra.mxu1 %v627_v33  ;;  %p1421_p3 = pnand %p1420_p1, %p1414_p8 }
  0x45   : > { %309 = vbcast.lane.b32.xlu1 %v307_v24, 256  ;;  %302 = vbcast.lane.b32.xlu0 %v300_v25, 256 }
  0x46   : > { %1196 = vmatprep.subr.mxu1 %v642_v34 }
  0x47   : > { %1197 = vmatpush3.msra.mxu1 %v626_v35 }
  0x48   : > { %1198 = vmatprep.subr.mxu1 %v641_v36 }
  0x49   : > { %323 = vbcast.lane.b32.xlu1 %v321_v27, 256  ;;  %316 = vbcast.lane.b32.xlu0 %v314_v28, 256 }
  0x4a   : > { %1199 = vmatpush3.msra.mxu1 %v625_v37 }
  0x4b   : > { %1200 = vmatprep.subr.mxu1 %v640_v38 }
  0x4c   : > { %1201 = vmatpush3.msra.mxu1 %v624_v39 }
  0x4d   : > { %1202 = vmatprep.subr.mxu1 %v639_v40  ;;  %896 = vperm.xlu0 %1348, %v893_v54  }
  0x4e   : > { %1203 = vmatpush3.msra.mxu1 %v623_v41 }
  0x4f   : > { %1204 = vmatprep.subr.mxu1 %v638_v42 }
  0x50   : > { %1205 = vmatpush3.msra.mxu1 %v622_v43 }
  0x51   : > { %1206 = vmatprep.subr.mxu1 %v637_v44 }
  0x52   : > { %1207 = vmatpush3.msra.mxu1 %v621_v45 }
  0x53   : > { %1208 = vmatprep.subr.mxu1 %v636_v46 }
  0x54   : > { %1209 = vmatpush3.msra.mxu1 %v620_v47 }
  0x55   : > { %1210 = vmatprep.subr.mxu1 %v635_v48 }
  0x56   : > { %1211 = vmatpush3.msra.mxu1 %v619_v49 }
  0x57   : > { %1212 = vmatprep.subr.mxu1 %v634_v50 }
  0x58   : > { %1213 = vmatpush3.msra.mxu1 %v618_v51 }
  0x59   : > { %1217 = vmatprep.subr.mxu1 %v681_v52 }
  0xaf   : > { %v289_v57 = vpop.permute.xlu1 %288  ;;  %v275_v59 = vpop.permute.xlu0 %274 }
  0xb0   : > { %vm338_vm0 = vcmp.eq.s32.totalorder %v289_v57, %v1628_v55  ;;  %vm339_vm1 = vcmp.eq.s32.totalorder %v289_v57, %v1631_v56  ;;  %vm341_vm2 = vcmp.eq.s32.totalorder %v289_v57, %v1634_v58  ;;  %vm330_vm3 = vcmp.eq.s32.totalorder %v275_v59, %v1628_v55 }
  0xb1   : > { %v1145_v60 = vsel %vm338_vm0, 1.0, %v1487_v1  ;;  %v1146_v61 = vsel %vm339_vm1, 1.0, %v1487_v1  ;;  %vm331_vm4 = vcmp.eq.s32.totalorder %v275_v59, %v1631_v56  ;;  %vm333_vm5 = vcmp.eq.s32.totalorder %v275_v59, %v1634_v58 }
  0xb2   : > { %v474_v62 = vrot.slane %v1145_v60, 4  ;;  %v1148_v63 = vsel %vm341_vm2, 1.0, %v1487_v1  ;;  %v480_v0 = vrot.slane %v1146_v61, 4  ;;  %v1137_v2 = vsel %vm330_vm3, 1.0, %v1487_v1 }
  0xb3   : > { %v1138_v3 = vsel %vm331_vm4, 1.0, %v1487_v1  ;;  %v1140_v4 = vsel %vm333_vm5, 1.0, %v1487_v1  ;;  %v492_v6 = vrot.slane %v1148_v63, 4  ;;  %v426_v8 = vrot.slane %v1137_v2, 4  ;;  %v296_v12 = vpop.permute.xlu1 %295  ;;  %v1656_v19 = vpop.permute.xlu0 %281 }
  0xb4   : > { %v475_v5 = vadd.f32 %v1145_v60, %v474_v62  ;;  %v481_v7 = vadd.f32 %v1146_v61, %v480_v0  ;;  %v432_v10 = vrot.slane %v1138_v3, 4  ;;  %v444_v11 = vrot.slane %v1140_v4, 4 }
  0xb5   : > { %v493_v14 = vadd.f32 %v1148_v63, %v492_v6  ;;  %v427_v16 = vadd.f32 %v1137_v2, %v426_v8  ;;  %vm342_vm6 = vcmp.eq.s32.totalorder %v296_v12, %v1628_v55  ;;  %vm343_vm7 = vcmp.eq.s32.totalorder %v296_v12, %v1631_v56 }
  0xb6   : > { %v476_v13 = vrot.slane %v475_v5, 2  ;;  %v482_v15 = vrot.slane %v481_v7, 2  ;;  %vm332_vm8 = vcmp.eq.s32.totalorder %v275_v59, %v1649_v9  ;;  %v433_v17 = vadd.f32 %v1138_v3, %v432_v10 }
  0xb7   : > { %v445_v18 = vadd.f32 %v1140_v4, %v444_v11  ;;  %vm340_vm9 = vcmp.eq.s32.totalorder %v289_v57, %v1649_v9  ;;  %vm345_vm10 = vcmp.eq.s32.totalorder %v296_v12, %v1634_v58  ;;  %v494_v21 = vrot.slane %v493_v14, 2  ;;  %v1679_v51 = vpop.permute.xlu1 %309 }
  0xb8   : > { %v477_v20 = vadd.f32 %v476_v13, %v475_v5  ;;  %v1149_v22 = vsel %vm342_vm6, 1.0, %v1487_v1  ;;  %v1150_v23 = vsel %vm343_vm7, 1.0, %v1487_v1  ;;  %v483_v24 = vadd.f32 %v482_v15, %v481_v7  ;;  %v1699_v7 = vpop.permute.xlu0 %302 }
  0xb9   : > { %v1139_v25 = vsel %vm332_vm8, 1.0, %v1487_v1  ;;  %v428_v26 = vrot.slane %v427_v16, 2  ;;  %v434_v27 = vrot.slane %v433_v17, 2  ;;  %v446_v28 = vrot.slane %v445_v18, 2 }
  0xba   : > { %v1152_v29 = vsel %vm345_vm10, 1.0, %v1487_v1  ;;  %vm334_vm11 = vcmp.eq.s32.totalorder %v1656_v19, %v1628_v55  ;;  %v1665_v30 = vsel %vm340_vm9, 1.0, %v1487_v1  ;;  %v498_v31 = vrot.slane %v1149_v22, 4 }
  0xbb   : > { %v504_v32 = vrot.slane %v1150_v23, 4  ;;  %vm335_vm12 = vcmp.eq.s32.totalorder %v1656_v19, %v1631_v56  ;;  %v478_v33 = vrot.slane %v477_v20, 1  ;;  %v495_v34 = vadd.f32 %v494_v21, %v493_v14 }
  0xbc   : > { %v438_v35 = vrot.slane %v1139_v25, 4  ;;  %vm337_vm13 = vcmp.eq.s32.totalorder %v1656_v19, %v1634_v58  ;;  %v429_v36 = vadd.f32 %v428_v26, %v427_v16  ;;  %v516_v37 = vrot.slane %v1152_v29, 4 }
  0xbd   : > { %v1141_v38 = vsel %vm334_vm11, 1.0, %v1487_v1  ;;  %v484_v39 = vrot.slane %v483_v24, 1  ;;  %v435_v40 = vadd.f32 %v434_v27, %v433_v17  ;;  %v447_v41 = vadd.f32 %v446_v28, %v445_v18 }
  0xbe   : > { %v1142_v42 = vsel %vm335_vm12, 1.0, %v1487_v1  ;;  %v486_v43 = vrot.slane %v1665_v30, 4  ;;  %v499_v44 = vadd.f32 %v1149_v22, %v498_v31  ;;  %v505_v45 = vadd.f32 %v1150_v23, %v504_v32 }
  0xbf   : > { %v1144_v46 = vsel %vm337_vm13, 1.0, %v1487_v1  ;;  %v1675_v47 = vadd.f32 %v478_v33, %v477_v20  ;;  %v496_v48 = vrot.slane %v495_v34, 1  ;;  %v1677_v49 = vadd.f32 %v1139_v25, %v438_v35 }
  0xc0   : > { %v450_v50 = vrot.slane %v1141_v38, 4  ;;  %v430_v52 = vrot.slane %v429_v36, 1  ;;  %vm344_vm14 = vcmp.eq.s32.totalorder %v296_v12, %v1649_v9  ;;  %v517_v53 = vadd.f32 %v1152_v29, %v516_v37 }
  0xc1   : > { %v456_v54 = vrot.slane %v1142_v42, 4  ;;  %v1682_v57 = vadd.f32 %v484_v39, %v483_v24  ;;  %v436_v59 = vrot.slane %v435_v40, 1  ;;  %v448_v60 = vrot.slane %v447_v41, 1  ;;  %v1718_v39 = vpop.permute.xlu1 %323 }
  0xc2   : > { %v468_v61 = vrot.slane %v1144_v46, 4  ;;  %v500_v62 = vrot.slane %v499_v44, 2  ;;  %v506_v63 = vrot.slane %v505_v45, 2  ;;  %vm350_vm15 = vcmp.eq.s32.totalorder %v1679_v51, %v1628_v55 }
  0xc3   : > { %vm353_vm0 = vcmp.eq.s32.totalorder %v1679_v51, %v1634_v58  ;;  %v1688_v0 = vadd.f32 %v496_v48, %v495_v34  ;;  %v1691_v2 = vsel %vm344_vm14, 1.0, %v1487_v1  ;;  %vm336_vm1 = vcmp.eq.s32.totalorder %v1656_v19, %v1649_v9 }
  0xc4   : > { %v451_v3 = vadd.f32 %v1141_v38, %v450_v50  ;;  %v1695_v4 = vadd.f32 %v430_v52, %v429_v36  ;;  %v518_v5 = vrot.slane %v517_v53, 2  ;;  %v457_v6 = vadd.f32 %v1142_v42, %v456_v54 }
  0xc5   : > { %vm351_vm2 = vcmp.eq.s32.totalorder %v1679_v51, %v1631_v56  ;;  %v1701_v8 = vadd.f32 %v436_v59, %v435_v40  ;;  %v469_v10 = vadd.f32 %v1144_v46, %v468_v61  ;;  %v1157_v11 = vsel %vm350_vm15, 1.0, %v1487_v1 }
  0xc6   : > { %v1160_v12 = vsel %vm353_vm0, 1.0, %v1487_v1  ;;  %v1705_v13 = vadd.f32 %v448_v60, %v447_v41  ;;  %v501_v14 = vadd.f32 %v500_v62, %v499_v44  ;;  %v507_v15 = vadd.f32 %v506_v63, %v505_v45 }
  0xc7   : > { %v1143_v16 = vsel %vm336_vm1, 1.0, %v1487_v1  ;;  %v452_v17 = vrot.slane %v451_v3, 2  ;;  %v1158_v18 = vsel %vm351_vm2, 1.0, %v1487_v1  ;;  %vm346_vm3 = vcmp.eq.s32.totalorder %v1699_v7, %v1628_v55 }
  0xc8   : > { %vm347_vm4 = vcmp.eq.s32.totalorder %v1699_v7, %v1631_v56  ;;  %v519_v19 = vadd.f32 %v518_v5, %v517_v53  ;;  %v458_v20 = vrot.slane %v457_v6, 2  ;;  %v546_v21 = vrot.slane %v1157_v11, 4 }
  0xc9   : > { %v564_v22 = vrot.slane %v1160_v12, 4  ;;  %v470_v23 = vrot.slane %v469_v10, 2  ;;  %vm349_vm5 = vcmp.eq.s32.totalorder %v1699_v7, %v1634_v58  ;;  %v1153_v24 = vsel %vm346_vm3, 1.0, %v1487_v1 }
  0xca   : > { %v1154_v25 = vsel %vm347_vm4, 1.0, %v1487_v1  ;;  %v502_v26 = vrot.slane %v501_v14, 1  ;;  %v508_v27 = vrot.slane %v507_v15, 1  ;;  %v462_v28 = vrot.slane %v1143_v16, 4 }
  0xcb   : > { %v552_v29 = vrot.slane %v1158_v18, 4  ;;  %v453_v31 = vadd.f32 %v452_v17, %v451_v3  ;;  %v1156_v32 = vsel %vm349_vm5, 1.0, %v1487_v1  ;;  %v522_v33 = vrot.slane %v1153_v24, 4 }
  0xcc   : > { %v528_v34 = vrot.slane %v1154_v25, 4  ;;  %v520_v35 = vrot.slane %v519_v19, 1  ;;  %v459_v36 = vadd.f32 %v458_v20, %v457_v6  ;;  %v547_v37 = vadd.f32 %v1157_v11, %v546_v21 }
  0xcd   : > { %v565_v38 = vadd.f32 %v1160_v12, %v564_v22  ;;  %v471_v40 = vadd.f32 %v470_v23, %v469_v10  ;;  %v523_v41 = vadd.f32 %v1153_v24, %v522_v33  ;;  %v540_v44 = vrot.slane %v1156_v32, 4  ;;  %v1736_v12 = vpop.permute.xlu0 %316 }
  0xce   : > { %v529_v42 = vadd.f32 %v1154_v25, %v528_v34  ;;  %v1720_v45 = vadd.f32 %v502_v26, %v501_v14  ;;  %v1722_v46 = vadd.f32 %v508_v27, %v507_v15  ;;  %v1724_v48 = vadd.f32 %v1143_v16, %v462_v28 }
  0xcf   : > { %v553_v50 = vadd.f32 %v1158_v18, %v552_v29  ;;  %v454_v52 = vrot.slane %v453_v31, 1  ;;  %v541_v54 = vadd.f32 %v1156_v32, %v540_v44  ;;  %vm358_vm6 = vcmp.eq.s32.totalorder %v1718_v39, %v1628_v55 }
  0xd0   : > { %v530_v53 = vrot.slane %v529_v42, 2  ;;  %v548_v59 = vrot.slane %v547_v37, 2  ;;  %v566_v60 = vrot.slane %v565_v38, 2  ;;  %vm359_vm7 = vcmp.eq.s32.totalorder %v1718_v39, %v1631_v56 }
  0xd1   : > { %vm361_vm8 = vcmp.eq.s32.totalorder %v1718_v39, %v1634_v58  ;;  %v1732_v61 = vadd.f32 %v520_v35, %v519_v19  ;;  %vm714_vm9 = vcmask 1041409   ;;  %v460_v62 = vrot.slane %v459_v36, 1 }
  0xd2   : > { %v472_v63 = vrot.slane %v471_v40, 1  ;;  %v524_v3 = vrot.slane %v523_v41, 2  ;;  %v554_v5 = vrot.slane %v553_v50, 2  ;;  %v542_v6 = vrot.slane %v541_v54, 2 }
  0xd3   : > { %v1165_v10 = vsel %vm358_vm6, 1.0, %v1487_v1  ;;  %v1166_v11 = vsel %vm359_vm7, 1.0, %v1487_v1  ;;  %vm716_vm10 = vcmask 1042434   ;;  %v1738_v14 = vadd.f32 %v454_v52, %v453_v31 }
  0xd4   : > { %vm348_vm11 = vcmp.eq.s32.totalorder %v1699_v7, %v1649_v9  ;;  %v531_v15 = vadd.f32 %v530_v53, %v529_v42  ;;  %v1168_v16 = vsel %vm361_vm8, 1.0, %v1487_v1  ;;  %vm718_vm12 = vcmask 1043459  }
  0xd5   : > { %v549_v17 = vadd.f32 %v548_v59, %v547_v37  ;;  %v1743_v18 = vadd.f32 %v566_v60, %v565_v38  ;;  %v594_v19 = vrot.slane %v1165_v10, 4  ;;  %v600_v20 = vrot.slane %v1166_v11, 4 }
  0xd6   : > { %vm720_vm13 = vcmask 1044484   ;;  %v461_v21 = vadd.f32 %v460_v62, %v459_v36  ;;  %v1745_v22 = vadd.f32 %v472_v63, %v471_v40  ;;  %v525_v23 = vadd.f32 %v524_v3, %v523_v41 }
  0xd7   : > { %vm354_vm14 = vcmp.eq.s32.totalorder %v1736_v12, %v1628_v55  ;;  %v555_v24 = vadd.f32 %v554_v5, %v553_v50  ;;  %v1750_v7 = vsel %vm348_vm11, 1.0, %v1487_v1  ;;  %v543_v25 = vadd.f32 %v542_v6, %v541_v54 }
  0xd8   : > { %v612_v26 = vrot.slane %v1168_v16, 4  ;;  %vm722_vm15 = vcmask 1045509   ;;  %v532_v27 = vrot.slane %v531_v15, 1  ;;  %v601_v28 = vadd.f32 %v1166_v11, %v600_v20 }
  0xd9   : > { %vm355_vm0 = vcmp.eq.s32.totalorder %v1736_v12, %v1631_v56  ;;  %vm357_vm1 = vcmp.eq.s32.totalorder %v1736_v12, %v1634_v58  ;;  %v550_v29 = vrot.slane %v549_v17, 1  ;;  %v568_v31 = vrot.slane %v1743_v18, 1 }
  0xda   : > { %v595_v32 = vadd.f32 %v1165_v10, %v594_v19  ;;  %v1161_v55 = vsel %vm354_vm14, 1.0, %v1487_v1  ;;  %v526_v33 = vrot.slane %v525_v23, 1  ;;  %v1162_v34 = vsel %vm355_vm0, 1.0, %v1487_v1 }
  0xdb   : > { %v1164_v35 = vsel %vm357_vm1, 1.0, %v1487_v1  ;;  %v570_v36 = vrot.slane %v1161_v55, 4  ;;  %v544_v37 = vrot.slane %v543_v25, 1  ;;  %v613_v38 = vadd.f32 %v1168_v16, %v612_v26 }
  0xdc   : > { %v576_v40 = vrot.slane %v1162_v34, 4  ;;  %v588_v41 = vrot.slane %v1164_v35, 4  ;;  %v533_v42 = vadd.f32 %v532_v27, %v531_v15  ;;  %v556_v44 = vrot.slane %v555_v24, 1 }
  0xdd   : > { %v571_v56 = vadd.f32 %v1161_v55, %v570_v36  ;;  %v602_v58 = vrot.slane %v601_v28, 2  ;;  %vm724_vm2 = vcmask 1046534   ;;  %v596_v50 = vrot.slane %v595_v32, 2 }
  0xde   : > { %v577_v52 = vadd.f32 %v1162_v34, %v576_v40  ;;  %v589_v53 = vadd.f32 %v1164_v35, %v588_v41  ;;  %vm726_vm3 = vcmask 1047559   ;;  %v728_v54 = vsel %vm714_vm9, %v461_v21, %v1701_v8 }
  0xdf   : > { %v572_v59 = vrot.slane %v571_v56, 2  ;;  %v557_v60 = vadd.f32 %v556_v44, %v555_v24  ;;  %v603_v62 = vadd.f32 %v602_v58, %v601_v28  ;;  %v729_v63 = vsel %vm716_vm10, %v1682_v57, %v728_v54  ;;  %v680_v44 = vld [vmem:[#allocation2 + $0x1f0] sm:$0xff] }
  0xe0   : > { %vm352_vm4 = vcmp.eq.s32.totalorder %v1679_v51, %v1649_v9  ;;  %v527_v3 = vadd.f32 %v526_v33, %v525_v23  ;;  %v578_v5 = vrot.slane %v577_v52, 2  ;;  %v590_v6 = vrot.slane %v589_v53, 2  ;;  %v679_v51 = vld [vmem:[#allocation2 + $0x1e8] sm:$0xff] }
  0xe1   : > { %v730_v10 = vsel %vm718_vm12, %v1722_v46, %v729_v63  ;;  %v545_v11 = vadd.f32 %v544_v37, %v543_v25  ;;  %v573_v15 = vadd.f32 %v572_v59, %v571_v56  ;;  %v604_v16 = vrot.slane %v603_v62, 1  ;;  %v664_v59 = vld [vmem:[#allocation2 + $0x170] sm:$0xff] }
  0xe2   : > { %v731_v8 = vsel %vm720_vm13, %v533_v42, %v730_v10  ;;  %v614_v19 = vrot.slane %v613_v38, 2  ;;  %v591_v20 = vadd.f32 %v590_v6, %v589_v53  ;;  %v579_v21 = vadd.f32 %v578_v5, %v577_v52  ;;  %v678_v6 = vld [vmem:[#allocation2 + $0x1e0] sm:$0xff] }
  0xe3   : > { %v551_v24 = vadd.f32 %v550_v29, %v549_v17  ;;  %v732_v57 = vsel %vm722_vm15, %v557_v60, %v731_v8  ;;  %v574_v26 = vrot.slane %v573_v15, 1  ;;  %v597_v27 = vadd.f32 %v596_v50, %v595_v32  ;;  %v661_v8 = vld [vmem:[#allocation2 + $0x158] sm:$0xff] }
  0xe4   : > { %v715_v23 = vsel %vm714_vm9, %v1738_v14, %v1695_v4  ;;  %v580_v28 = vrot.slane %v579_v21, 1  ;;  %v605_v55 = vadd.f32 %v604_v16, %v603_v62  ;;  %v569_v25 = vadd.f32 %v568_v31, %v1743_v18  ;;  %v663_v62 = vld [vmem:[#allocation2 + $0x168] sm:$0xff]  ;;  %v677_v16 = vld [vmem:[#allocation2 + $0x1d8] sm:$0xff] }
  0xe5   : > { %v717_v46 = vsel %vm716_vm10, %v1675_v47, %v715_v23  ;;  %v575_v33 = vadd.f32 %v574_v26, %v573_v15  ;;  %v598_v34 = vrot.slane %v597_v27, 1  ;;  %v592_v29 = vrot.slane %v591_v20, 1  ;;  %v660_v26 = vld [vmem:[#allocation2 + $0x150] sm:$0xff]  ;;  %v675_v23 = vld [vmem:[#allocation2 + $0x1c8] sm:$0xff] }
  0xe6   : > { %v719_v17 = vsel %vm718_vm12, %v1720_v45, %v717_v46  ;;  %v581_v35 = vadd.f32 %v580_v28, %v579_v21  ;;  %v615_v36 = vadd.f32 %v614_v19, %v613_v38  ;;  %v742_v4 = vsel %vm714_vm9, %v1745_v22, %v1705_v13  ;;  %v665_v38 = vld [vmem:[#allocation2 + $0x178] sm:$0xff]  ;;  %v676_v21 = vld [vmem:[#allocation2 + $0x1d0] sm:$0xff] }
  0xe7   : > { %v721_v32 = vsel %vm720_vm13, %v527_v3, %v719_v17  ;;  %v599_v14 = vadd.f32 %v598_v34, %v597_v27  ;;  %v593_v47 = vadd.f32 %v592_v29, %v591_v20  ;;  %v743_v18 = vsel %vm716_vm10, %v1688_v0, %v742_v4  ;;  %v657_v4 = vld [vmem:[#allocation2 + $0x138] sm:$0xff] }
  0xe8   : > { %v723_v37 = vsel %vm722_vm15, %v551_v24, %v721_v32  ;;  %v733_v31 = vsel %vm724_vm2, %v581_v35, %v732_v57  ;;  %v616_v40 = vrot.slane %v615_v36, 1  ;;  %v744_v41 = vsel %vm718_vm12, %v1732_v61, %v743_v18  ;;  %v658_v35 = vld [vmem:[#allocation2 + $0x140] sm:$0xff] }
  0xe9   : > { %v725_v45 = vsel %vm724_vm2, %v575_v33, %v723_v37  ;;  %vm356_vm5 = vcmp.eq.s32.totalorder %v1736_v12, %v1649_v9  ;;  %v734_v13 = vsel %vm726_vm3, %v605_v55, %v733_v31  ;;  %v745_v56 = vsel %vm720_vm13, %v545_v11, %v744_v41  ;;  %v662_v11 = vld [vmem:[#allocation2 + $0x160] sm:$0xff]  ;;  %v672_v31 = vld [vmem:[#allocation2 + $0x1b0] sm:$0xff] }
  0xea   : > { %v727_v22 = vsel %vm726_vm3, %v599_v14, %v725_v45  ;;  %v510_v0 = vrot.slane %v1691_v2, 4  ;;  %v464_v42 = vrot.slane %v1724_v48, 2  ;;  %817 = vmatprep.mubr.f32.mxu1 %v734_v13  ;;  %v617_v58 = vadd.f32 %v616_v40, %v615_v36  ;;  %v674_v33 = vld [vmem:[#allocation2 + $0x1c0] sm:$0xff]  ;;  %v673_v36 = vld [vmem:[#allocation2 + $0x1b8] sm:$0xff]  ;;  %v656_v13 = vld [vmem:[#allocation2 + $0x130] sm:$0xff] }
  0xeb   : > { %v746_v50 = vsel %vm722_vm15, %v569_v25, %v745_v56  ;;  %v487_v61 = vadd.f32 %v1665_v30, %v486_v43  ;;  %v1159_v52 = vsel %vm352_vm4, 1.0, %v1487_v1  ;;  %v534_v53 = vrot.slane %v1750_v7, 4  ;;  %818 = vmatmul.mubr.f32.vlgmr.msra.gmra.mxu1 %v727_v22  ;;  %v671_v22 = vld [vmem:[#allocation2 + $0x1a8] sm:$0xff] }
  0xec   : > { %v747_v54 = vsel %vm724_vm2, %v593_v47, %v746_v50  ;;  %v440_v60 = vrot.slane %v1677_v49, 2  ;;  %vm360_vm6 = vcmp.eq.s32.totalorder %v1718_v39, %v1649_v9  ;;  %v1163_v30 = vsel %vm356_vm5, 1.0, %v1487_v1  ;;  %1218 = vmatpush3.msra.mxu1 %v665_v38  ;;  %v655_v38 = vld [vmem:[#allocation2 + $0x128] sm:$0xff] }
  0xed   : > { %v748_v43 = vsel %vm726_vm3, %v617_v58, %v747_v54  ;;  %1219 = vmatprep.subr.mxu1 %v680_v44  ;;  %v511_v63 = vadd.f32 %v1691_v2, %v510_v0  ;;  %v465_v3 = vadd.f32 %v464_v42, %v1724_v48  ;;  %v558_v5 = vrot.slane %v1159_v52, 4  ;;  %v670_v58 = vld [vmem:[#allocation2 + $0x1a0] sm:$0xff] }
  0xee   : > { %887 = vmatprep.mubr.f32.mxu1 %v748_v43  ;;  %1220 = vmatpush3.msra.mxu1 %v664_v59  ;;  %v488_v39 = vrot.slane %v487_v61, 2  ;;  %v535_v10 = vadd.f32 %v1750_v7, %v534_v53  ;;  %v1167_v9 = vsel %vm360_vm6, 1.0, %v1487_v1  ;;  %v582_v12 = vrot.slane %v1163_v30, 4  ;;  %v669_v53 = vld [vmem:[#allocation2 + $0x198] sm:$0xff] }
  0xef   : > { %1221 = vmatprep.subr.mxu1 %v679_v51  ;;  %v441_v15 = vadd.f32 %v440_v60, %v1677_v49  ;;  %v512_v2 = vrot.slane %v511_v63, 2  ;;  %v466_v19 = vrot.slane %v465_v3, 1  ;;  %v559_v48 = vadd.f32 %v1159_v52, %v558_v5  ;;  %v659_v49 = vld [vmem:[#allocation2 + $0x148] sm:$0xff]  ;;  %v654_v52 = vld [vmem:[#allocation2 + $0x120] sm:$0xff]  ;;  %v653_v59 = vld [vmem:[#allocation2 + $0x118] sm:$0xff] }
  0xf0   : > { %1222 = vmatpush3.msra.mxu1 %v663_v62  ;;  %v606_v20 = vrot.slane %v1167_v9, 4  ;;  %v489_v24 = vadd.f32 %v488_v39, %v487_v61  ;;  %v536_v57 = vrot.slane %v535_v10, 2  ;;  %v583_v7 = vadd.f32 %v1163_v30, %v582_v12  ;;  %v668_v30 = vld [vmem:[#allocation2 + $0x190] sm:$0xff]  ;;  %v651_v5 = vld [vmem:[#allocation2 + $0x108] sm:$0xff] }
  0xf1   : > { %1223 = vmatprep.subr.mxu1 %v678_v6  ;;  %v442_v27 = vrot.slane %v441_v15, 1  ;;  %v513_v28 = vadd.f32 %v512_v2, %v511_v63  ;;  %v467_v55 = vadd.f32 %v466_v19, %v465_v3  ;;  %v560_v46 = vrot.slane %v559_v48, 2  ;;  %v652_v51 = vld [vmem:[#allocation2 + $0x110] sm:$0xff]  ;;  %v667_v3 = vld [vmem:[#allocation2 + $0x188] sm:$0xff]  ;;  %v666_v6 = vld [vmem:[#allocation2 + $0x180] sm:$0xff] }
  0xf2   : > { %1224 = vmatpush3.msra.mxu1 %v662_v11  ;;  %v607_v25 = vadd.f32 %v1167_v9, %v606_v20  ;;  %v490_v34 = vrot.slane %v489_v24, 1  ;;  %v537_v17 = vadd.f32 %v536_v57, %v535_v10  ;;  %v584_v29 = vrot.slane %v583_v7, 2  ;;  %v650_v9 = vld [vmem:[#allocation2 + $0x100] sm:$0xff]  ;;  %v1353_v19 = vld [vmem:[#allocation5 + $0x18] sm:$0xff]   ;;  %v1355_v20 = vld [vmem:[#allocation5 + $0x8] sm:$0xff]  }
  0xf3   : > { %1225 = vmatprep.subr.mxu1 %v677_v16  ;;  %v443_v32 = vadd.f32 %v442_v27, %v441_v15  ;;  %v514_v14 = vrot.slane %v513_v28, 1  ;;  %v561_v47 = vadd.f32 %v560_v46, %v559_v48  ;;  %v1349_v15 = vld [vmem:[#allocation5 + $0x38] sm:$0xff]   ;;  %v1350_v16 = vld [vmem:[#allocation5 + $0x30] sm:$0xff]   ;;  %v1352_v2 = vld [vmem:[#allocation5 + $0x20] sm:$0xff]   ;;  %vm1489_vm7 = vmmov 0  }
  0xf4   : > { %1226 = vmatpush3.msra.mxu1 %v661_v8  ;;  %v608_v18 = vrot.slane %v607_v25, 2  ;;  %v491_v45 = vadd.f32 %v490_v34, %v489_v24  ;;  %v538_v40 = vrot.slane %v537_v17, 1  ;;  %v585_v41 = vadd.f32 %v584_v29, %v583_v7  ;;  %1262 = vmatpush3.bf16.msra.mxu0 %v1349_v15  ;;  %v1351_v8 = vld [vmem:[#allocation5 + $0x28] sm:$0xff]   ;;  %v1354_v48 = vld [vmem:[#allocation5 + $0x10] sm:$0xff]  }
  0xf5   : > { %1227 = vmatprep.subr.mxu1 %v676_v21  ;;  %v735_v37 = vsel %vm714_vm9, %v467_v55, %v443_v32  ;;  %v515_v0 = vadd.f32 %v514_v14, %v513_v28  ;;  %v562_v42 = vrot.slane %v561_v47, 1  ;;  %1263 = vmatprep.subr.bf16.mxu0 %v1487_v1  ;;  %v1356_v21 = vld [vmem:[#allocation5] sm:$0xff]  }
  0xf6   : > { %1228 = vmatpush3.msra.mxu1 %v660_v26  ;;  %v736_v56 = vsel %vm716_vm10, %v491_v45, %v735_v37  ;;  %v609_v44 = vadd.f32 %v608_v18, %v607_v25  ;;  %v539_v50 = vadd.f32 %v538_v40, %v537_v17  ;;  %v586_v61 = vrot.slane %v585_v41, 1  ;;  %1277 = vmatprep.mubr.msk.bf16.mxu0 %vm1489_vm7, %v1487_v1  ;;  %v1169_v25 = vld [vmem:[%s1875_s4] ss:$0 sm:$0xff] }
  0xf7   : > { %1229 = vmatprep.subr.mxu1 %v675_v23  ;;  %v737_v54 = vsel %vm718_vm12, %v515_v0, %v736_v56  ;;  %v563_v60 = vadd.f32 %v562_v42, %v561_v47 }
  0xf8   : > { %1230 = vmatpush3.msra.mxu1 %v659_v49  ;;  %v610_v43 = vrot.slane %v609_v44, 1  ;;  %v587_v62 = vadd.f32 %v586_v61, %v585_v41  ;;  %v738_v63 = vsel %vm720_vm13, %v539_v50, %v737_v54  ;;  %1264 = vmatpush3.bf16.msra.mxu0 %v1350_v16  ;;  %v897_v49 = vpop.permute.xlu0 %896 }
  0xf9   : > { %1231 = vmatprep.subr.mxu1 %v674_v33  ;;  %v739_v10 = vsel %vm722_vm15, %v563_v60, %v738_v63  ;;  %1265 = vmatprep.subr.bf16.mxu0 %v1487_v1 }
  0xfa   : > { %1232 = vmatpush3.msra.mxu1 %v658_v35  ;;  %v611_v39 = vadd.f32 %v610_v43, %v609_v44  ;;  %v740_v12 = vsel %vm724_vm2, %v587_v62, %v739_v10 }
  0xfb   : > { %1233 = vmatprep.subr.mxu1 %v673_v36 }
  0xfc   : > { %1234 = vmatpush3.msra.mxu1 %v657_v4  ;;  %v741_v11 = vsel %vm726_vm3, %v611_v39, %v740_v12  ;;  %1266 = vmatpush3.bf16.msra.mxu0 %v1351_v8 }
  0xfd   : > { %1235 = vmatprep.subr.mxu1 %v672_v31  ;;  %1267 = vmatprep.subr.bf16.mxu0 %v1487_v1 }
  0xfe   : > { %1236 = vmatpush3.msra.mxu1 %v656_v13 }
  0xff   : > { %1237 = vmatprep.subr.mxu1 %v671_v22 }
 0x100   : > { %1238 = vmatpush3.msra.mxu1 %v655_v38  ;;  %1268 = vmatpush3.bf16.msra.mxu0 %v1352_v2 }
 0x101   : > { %1239 = vmatprep.subr.mxu1 %v670_v58  ;;  %1269 = vmatprep.subr.bf16.mxu0 %v1487_v1 }
 0x102   : > { %1240 = vmatpush3.msra.mxu1 %v654_v52 }
 0x103   : > { %1241 = vmatprep.subr.mxu1 %v669_v53 }
 0x104   : > { %1242 = vmatpush3.msra.mxu1 %v653_v59  ;;  %1270 = vmatpush3.bf16.msra.mxu0 %v1353_v19 }
 0x105   : > { %1243 = vmatprep.subr.mxu1 %v668_v30  ;;  %1271 = vmatprep.subr.bf16.mxu0 %v1487_v1 }
 0x106   : > { %1244 = vmatpush3.msra.mxu1 %v652_v51 }
 0x107   : > { %1245 = vmatprep.subr.mxu1 %v667_v3 }
 0x108   : > { %1246 = vmatpush3.msra.mxu1 %v651_v5  ;;  %1272 = vmatpush3.bf16.msra.mxu0 %v1354_v48 }
 0x109   : > { %1247 = vmatprep.subr.mxu1 %v666_v6  ;;  %1273 = vmatprep.subr.bf16.mxu0 %v1487_v1 }
 0x10a   : > { %1248 = vmatpush3.msra.mxu1 %v650_v9 }
 0x10b   : > { %888 = vmatmul.mubr.f32.vlgmr.msra.gmra.mxu1 %v741_v11 }
 0x10c   : > { %1274 = vmatpush3.bf16.msra.mxu0 %v1355_v20 }
 0x10d   : > { %1275 = vmatprep.subr.bf16.mxu0 %v1487_v1 }
 0x110   : > { %1276 = vmatpush3.bf16.msra.mxu0 %v1356_v21 }
 0x1ab   : > { %v1214_v24 = vpop.f32.mrf.mxu1 }
 0x1ad   : > { %v1215_v57 = vpop.f32.mrf.mxu1 }
 0x1ae   : > { %v1216_v27 = vadd.f32 %v1215_v57, %v1214_v24 }
 0x1cb   : > { %v1249_v7 = vpop.f32.mrf.mxu1 }
 0x1cd   : > { %v1250_v26 = vpop.f32.mrf.mxu1 }
 0x1ce   : > { %v1251_v23 = vadd.f32 %v1250_v26, %v1249_v7 }
 0x1d0   : > { %v890_v28 = vadd.f32 %v1251_v23, %v1216_v27 }
 0x1d2   : > { %v899_v55 = vmul.f32 %v897_v49, %v890_v28 }
 0x1d4   : > { %v900_v46 = vpack.c.bf16 %v899_v55, %v899_v55 }
 0x1d6   : > { %1278 = vmatmul.mubr.bf16.vlgmr.msra.gmra.mxu0 %v900_v46 }
 0x296   : > { %v1006_v33 = vpop.f32.mrf.mxu0 }
 0x297   : > { %v1007_v1 = vadd.f32 %v1169_v25, %v1006_v33 }
 0x298   : > { %v1279_v34 = vpop.f32.mrf.mxu0 }
 0x299   : > { %v1012_v17 = vmul.f32 %v1007_v1, %v1007_v1 }
 0x29a   : > { %v1009_v29 = vpop.f32.mrf.mxu0 }
 0x29b   : > { %1013 = vadd.xlane.f32.xlu1 %v1012_v17 }
 0x29c   : > { %v1280_v35 = vpop.f32.mrf.mxu0 }
 0x324   : > { %v1014_v32 = vpop.xlane.xlu1 %1013 }
 0x325   : > { %v1015_v36 = vadd.f32 1e-12, %v1014_v32 }
 0x327   : > { %1357 = vrsqrt.f32 %v1015_v36 }
 0x334   : > { %v1358_v4 = vpop.eup %1357 }
 0x335   : > { %v1017_v14 = vmul.f32 %v1358_v4, %v1007_v1 }
 0x337   : > { %1018 = vst [vmem:[%s258_s23] sm:$0xff] %v1017_v14 }
 0x338   : > { %1424 = shalt.err (!%p1421_p3)
}
 0x339   : > { %s1425_s11 = scalar_lea.hbm %s1031_s6, 128  ;;  %s1429_s14 = scalar_lea.hbm %s1876_s5, 256 }
 0x33a   : > { %p1426_p2 = scmp.ne.s32.totalorder %s1031_s6, %s1425_s11  ;;  %p1430_p6 = scmp.lt.s32.totalorder %s1031_s6, %s1876_s5 }
 0x33b   : > { %p1431_p9 = scmp.lt.s32.totalorder %s1429_s14, %s1425_s11 }
 0x33c   : > { %p1427_p4 = pnand %p1426_p2, %p1559_p5 }
 0x33d   : > { %p1432_p7 = por %p1431_p9, %p1430_p6 }
 0x33e   : > { %p1428_p13 = pneg %p1427_p4 }
 0x340   : > { %p1433_p10 = pnand %p1432_p7, %p1428_p13 }
 0x342   : > { %1436 = shalt.err (!%p1433_p10)
}
 0x343   : > { %1289 = dma.vmem_to_hbm [thread:$0]  (%p1559_p5), %s1034_s25, 128, %s1031_s6, %s1020_s7  }
 0x344 PF: > { %p1306_p12 = scmp.ge.s32.totalorder %s1479_s21, 2  ;;  %s1045_s17 = sand.u32 1, %s1467_s18  }
 0x345   : > { %p1886_p8 = scmp.ne.s32.totalorder %s1879_s29, 0  ;;  %s1046_s23 = scalar_lea.sflag [#allocation4], %s1045_s17 }
 0x347   : > { %p1299_p11 = pnand %p1306_p12, %p1886_p8 }
 0x349   : > { %p1300_p0 = pneg %p1299_p11 }
 0x34b   : > { %1462 = dma.done.wait (%p1300_p0), %s1046_s23, 128  }
 0x34c   : > { %1464 = vsyncadd (%p1300_p0), %s1046_s23, 4294967168  ;;  %p17_p1 = scmp.ge.s32.totalorder %s1546_s24, 4   ;;  %s1887_s18 = smov %s1471_s19 }
 0x34d   : > { %s1888_s19 = smov %s1475_s20  ;;  %s1889_s20 = smov %s1557_s27 }
 0x34e   : > { %s1890_s21 = smov %s1546_s24  ;;  %19 = sbr.rel (!%p17_p1) target bundleno = 5 (0x5), region = 87 }
 0x353   :  { %1051 = vsyncpa [#allocation3], 1 }
 0x354   :  { %1053 = vsyncpa [#allocation3 + $0x1], 1 }
 0x355   :  { %1054 = vsyncpa [#allocation6], 1 }
 0x356   :  { %1055 = vsyncpa [#allocation4], 1 }
 0x357   :  { %1057 = vsyncpa [#allocation4 + $0x1], 1 }

</bundles_post_ra>
